<compile_context>
chip_gen: v6e
topology: v6e:2x2x1
jax: 0.10.0
libtpu: 0.0.40
codegen_flags: <defaults>
</compile_context>

<pallas_src>
import functools

import jax
import jax.numpy as jnp
from jax.experimental import pallas as pl
from jax.experimental.pallas import tpu as pltpu


def _round_up(x, m):
    return ((x + m - 1) // m) * m


# ----------------------------------------------------------------------------
# Pallas kernel: single grid step, whole (C, Npos) slab resident in VMEM.
# ----------------------------------------------------------------------------
def _bottleneck_kernel(Wp, x_ref, m_ref, w1_ref, b1_ref, w2_ref, b2_ref,
                       w3_ref, b3_ref, out_ref):
    Np = x_ref.shape[-1]

    # conv1_block: 1x1 conv (+ folded BN) + ReLU, then zero the spatial-pad
    # columns so they behave as SAME-padding zeros for the 3x3 conv below.
    t1 = jnp.dot(w1_ref[...], x_ref[...], preferred_element_type=jnp.float32)
    t1 = jnp.maximum(t1 + b1_ref[...], 0.0) * m_ref[...]          # (Cmid, Np) f32

    # conv2_block: 3x3 conv (pad=1, folded BN) + ReLU fused into ONE matmul
    # with K = 9*Cmid.  tap(dy,dx)[c, p] = t1[c, p + dy*Wp + dx]; since the
    # slab is already zero-padded per image, no per-tap boundary masks are
    # needed.  Rolls stay in f32 (safe lowering); one cast to bf16 afterwards.
    taps = []
    for dy in (-1, 0, 1):
        for dx in (-1, 0, 1):
            s = dy * Wp + dx
            taps.append(t1 if s == 0 else pltpu.roll(t1, (-s) % Np, 1))
    cat = jnp.concatenate(taps, axis=0).astype(jnp.bfloat16)       # (9*Cmid, Np)
    t2 = jnp.dot(w2_ref[...], cat, preferred_element_type=jnp.float32)
    t2 = jnp.maximum(t2 + b2_ref[...], 0.0).astype(jnp.bfloat16)   # (Cmid, Np)

    # conv3_block: 1x1 conv (+ folded BN) + ReLU -> lane-dense (Cout, Np) store.
    t3 = jnp.dot(w3_ref[...], t2, preferred_element_type=jnp.float32)
    out_ref[...] = jnp.maximum(t3 + b3_ref[...], 0.0)


# ----------------------------------------------------------------------------
# Kernel-side parameter packing: transpose to channels-major, pad all channel
# axes to multiples of 8 (sublane tile) so the 9-tap sublane concatenation and
# the output store are tile-aligned, cast weights to bf16.
# ----------------------------------------------------------------------------
def _pack_kernel_params(params, Cin, Cin_p):
    Cmid = params["b1"].shape[0]
    Cout = params["b3"].shape[0]
    Cmid_p = _round_up(Cmid, 8)
    Cout_p = _round_up(Cout, 8)
    dpm = Cmid_p - Cmid
    dpo = Cout_p - Cout

    w1 = params["w1_hwio"].reshape(Cin, Cmid).T                    # (Cmid, Cin)
    w1 = jnp.pad(w1, ((0, dpm), (0, Cin_p - Cin)))
    b1 = jnp.pad(params["b1"], (0, dpm)).reshape(Cmid_p, 1)

    w2 = jnp.pad(params["w2_hwio"], ((0, 0), (0, 0), (0, dpm), (0, dpm)))
    w2 = w2.reshape(9 * Cmid_p, Cmid_p).T                          # (Cmid, 9*Cmid)
    b2 = jnp.pad(params["b2"], (0, dpm)).reshape(Cmid_p, 1)

    w3 = params["w3_hwio"].reshape(Cmid, Cout).T                   # (Cout, Cmid)
    w3 = jnp.pad(w3, ((0, dpo), (0, dpm)))
    b3 = jnp.pad(params["b3"], (0, dpo)).reshape(Cout_p, 1)

    return (w1.astype(jnp.bfloat16), b1.astype(jnp.float32),
            w2.astype(jnp.bfloat16), b2.astype(jnp.float32),
            w3.astype(jnp.bfloat16), b3.astype(jnp.float32),
            Cmid_p, Cout_p)


# ----------------------------------------------------------------------------
# Wrapper
# ----------------------------------------------------------------------------
def branch_bottleneck(x_nchw, params, channel='false'):
    B, Cin, H, W = x_nchw.shape
    Hp, Wp = H + 2, W + 2
    Np0 = B * Hp * Wp
    Np = _round_up(Np0, 128)                    # lane-dense stores, aligned rolls
    Cin_p = _round_up(Cin, 8)
    Cout = params["b3"].shape[0]

    (w1, b1, w2, b2, w3, b3,
     Cmid_p, Cout_p) = _pack_kernel_params(params, Cin, Cin_p)

    # NCHW -> channels-major flat slab (Cin_p, Np) with zero spatial padding.
    xp = jnp.pad(x_nchw, ((0, 0), (0, 0), (1, 1), (1, 1)))
    xf = jnp.transpose(xp, (1, 0, 2, 3)).reshape(Cin, Np0)
    xf = jnp.pad(xf, ((0, Cin_p - Cin), (0, Np - Np0))).astype(jnp.bfloat16)

    # Validity mask: 1 at real image positions, 0 at padding / tail columns.
    m = jnp.pad(jnp.ones((B, H, W), jnp.float32), ((0, 0), (1, 1), (1, 1)))
    m = jnp.pad(m.reshape(1, Np0), ((0, 0), (0, Np - Np0)))

    kernel = functools.partial(_bottleneck_kernel, Wp)
    out_flat = pl.pallas_call(
        kernel,
        out_shape=jax.ShapeDtypeStruct((Cout_p, Np), jnp.float32),
        grid=(1,),
        in_specs=[
            pl.BlockSpec((Cin_p, Np), lambda i: (0, 0)),
            pl.BlockSpec((1, Np), lambda i: (0, 0)),
            pl.BlockSpec((Cmid_p, Cin_p), lambda i: (0, 0)),
            pl.BlockSpec((Cmid_p, 1), lambda i: (0, 0)),
            pl.BlockSpec((Cmid_p, 9 * Cmid_p), lambda i: (0, 0)),
            pl.BlockSpec((Cmid_p, 1), lambda i: (0, 0)),
            pl.BlockSpec((Cout_p, Cmid_p), lambda i: (0, 0)),
            pl.BlockSpec((Cout_p, 1), lambda i: (0, 0)),
        ],
        out_specs=pl.BlockSpec((Cout_p, Np), lambda i: (0, 0)),
        compiler_params=pltpu.CompilerParams(
            dimension_semantics=("arbitrary",)),
    )(xf, m, w1, b1, w2, b2, w3, b3)
    # TODO(synk): for large H*W (v7x 64 MiB VMEM / dual TensorCore) tile the
    # position axis into 128-multiple chunks with a one-row halo instead of a
    # single whole-slab step, and raise vmem_limit_bytes as needed.

    out = out_flat[:Cout, :Np0].reshape(Cout, B, Hp, Wp)[:, :, 1:H + 1, 1:W + 1]
    out = jnp.transpose(out, (1, 0, 2, 3))                    # (B, Cout, H, W)

    out1 = None
    if channel == 'true':
        # conv4_block: 1x1 conv to 1 channel + ReLU (no BN).  Trivial matvec,
        # computed in XLA on the kernel output so the Pallas output stays
        # lane-dense and no work is done when channel='false'.
        out1 = jnp.maximum(
            jnp.einsum('bchw,c->bhw', out, params["w4"],
                       precision=jax.lax.Precision.HIGHEST) + params["b4"],
            0.0)[:, None]
    return out, out1


# ----------------------------------------------------------------------------
# Deterministic parameter init (BN folded, eval-mode semantics)
# ----------------------------------------------------------------------------
def _fold_bn(w_hwio, b, gamma, beta, mean, var, eps=1e-5):
    scale = gamma / jnp.sqrt(var + eps)          # per output channel (last dim)
    return w_hwio * scale, (b - mean) * scale + beta


def init_params(key, Cin, Cout):
    Cmid = Cin // 4
    ks = jax.random.split(key, 11)

    def conv_w(k, shape):
        fan_in = shape[0] * shape[1] * shape[2]
        return jax.random.normal(k, shape, jnp.float32) / jnp.sqrt(float(fan_in))

    def bn(k, c):
        k1, k2, k3, k4 = jax.random.split(k, 4)
        gamma = 1.0 + 0.1 * jax.random.normal(k1, (c,), jnp.float32)
        beta = 0.1 * jax.random.normal(k2, (c,), jnp.float32)
        mean = 0.1 * jax.random.normal(k3, (c,), jnp.float32)
        var = jax.random.uniform(k4, (c,), jnp.float32, minval=0.5, maxval=1.5)
        return gamma, beta, mean, var

    w1 = conv_w(ks[0], (1, 1, Cin, Cmid))
    b1 = 0.1 * jax.random.normal(ks[1], (Cmid,), jnp.float32)
    w1, b1 = _fold_bn(w1, b1, *bn(ks[2], Cmid))

    w2 = conv_w(ks[3], (3, 3, Cmid, Cmid))
    b2 = 0.1 * jax.random.normal(ks[4], (Cmid,), jnp.float32)
    w2, b2 = _fold_bn(w2, b2, *bn(ks[5], Cmid))

    w3 = conv_w(ks[6], (1, 1, Cmid, Cout))
    b3 = 0.1 * jax.random.normal(ks[7], (Cout,), jnp.float32)
    w3, b3 = _fold_bn(w3, b3, *bn(ks[8], Cout))

    w4 = conv_w(ks[9], (1, 1, Cout, 1)).reshape(Cout)   # conv4 has no BN
    b4 = 0.1 * jax.random.normal(ks[10], (), jnp.float32)

    return dict(w1_hwio=w1, b1=b1, w2_hwio=w2, b2=b2,
                w3_hwio=w3, b3=b3, w4=w4, b4=b4)


# ----------------------------------------------------------------------------
# Pure-JAX/XLA reference.  The kernel does its matmuls in bf16 with f32
# accumulation; the reference applies the same bf16 rounding to the conv
# inputs/weights (f32 accumulation via HIGHEST precision), so the comparison
# isolates structural correctness (padding, taps, BN folding, ReLU).
# ----------------------------------------------------------------------------
def ref_forward(x_nchw, params):
    bf = lambda a: a.astype(jnp.bfloat16).astype(jnp.float32)
    x = jnp.transpose(x_nchw, (0, 2, 3, 1))
    dn = ('NHWC', 'HWIO', 'NHWC')
    P = jax.lax.Precision.HIGHEST

    def conv(x, w, b, pad):
        y = jax.lax.conv_general_dilated(bf(x), bf(w), (1, 1), pad,
                                         dimension_numbers=dn, precision=P)
        return jnp.maximum(y + b, 0.0)

    t1 = conv(x, params["w1_hwio"], params["b1"], 'VALID')
    t2 = conv(t1, params["w2_hwio"], params["b2"], 'SAME')
    t3 = conv(t2, params["w3_hwio"], params["b3"], 'VALID')
    out = jnp.transpose(t3, (0, 3, 1, 2))
    out1 = jnp.maximum(
        jnp.einsum('bhwc,c->bhw', t3, params["w4"], precision=P) + params["b4"],
        0.0)[:, None]
    return out, out1


if __name__ == "__main__":
    key = jax.random.PRNGKey(0)
    kx, kp = jax.random.split(key)

    B, Cin, H, W = 2, 16, 16, 16
    Cout = 32
    x = jax.random.normal(kx, (B, Cin, H, W), jnp.float32)
    params = init_params(kp, Cin, Cout)

    out, out1 = branch_bottleneck(x, params, channel='true')
    out = jax.block_until_ready(out)
    out1 = jax.block_until_ready(out1)

    ref_out, ref_out1 = ref_forward(x, params)
    assert out.shape == (B, Cout, H, W) and out1.shape == (B, 1, H, W)
    assert jnp.allclose(out, ref_out, rtol=2e-2, atol=2e-2)
    assert jnp.allclose(out1, ref_out1, rtol=2e-2, atol=2e-2)

    # channel='false' path: no second output computed.
    out_f, out1_f = branch_bottleneck(x, params, channel='false')
    out_f = jax.block_until_ready(out_f)
    assert out1_f is None
    assert jnp.allclose(out_f, out, rtol=1e-5, atol=1e-5)

    print("KERNEL_OK")
</pallas_src>

<mosaic_0001>
module attributes {stable_mosaic.version = 11 : i64} {
  func.func @_bottleneck_kernel(%arg0: i32, %arg1: memref<16x768xbf16, #tpu.memory_space<vmem>>, %arg2: memref<1x768xf32, #tpu.memory_space<vmem>>, %arg3: memref<8x16xbf16, #tpu.memory_space<vmem>>, %arg4: memref<8x1xf32, #tpu.memory_space<vmem>>, %arg5: memref<8x72xbf16, #tpu.memory_space<vmem>>, %arg6: memref<8x1xf32, #tpu.memory_space<vmem>>, %arg7: memref<32x8xbf16, #tpu.memory_space<vmem>>, %arg8: memref<32x1xf32, #tpu.memory_space<vmem>>, %arg9: memref<32x768xf32, #tpu.memory_space<vmem>>) attributes {dimension_semantics = [#tpu.dimension_semantics<arbitrary>], iteration_bounds = array<i64: 1>, scalar_prefetch = 0 : i64, scratch_operands = 0 : i64, tpu.core_type = #tpu.core_type<tc>, window_params = [{pipeline_mode = #tpu.pipeline_mode<synchronous>, transform_indices = @transform_0, window_bounds = array<i64: 16, 768>}, {pipeline_mode = #tpu.pipeline_mode<synchronous>, transform_indices = @transform_1, window_bounds = array<i64: 1, 768>}, {pipeline_mode = #tpu.pipeline_mode<synchronous>, transform_indices = @transform_2, window_bounds = array<i64: 8, 16>}, {pipeline_mode = #tpu.pipeline_mode<synchronous>, transform_indices = @transform_3, window_bounds = array<i64: 8, 1>}, {pipeline_mode = #tpu.pipeline_mode<synchronous>, transform_indices = @transform_4, window_bounds = array<i64: 8, 72>}, {pipeline_mode = #tpu.pipeline_mode<synchronous>, transform_indices = @transform_5, window_bounds = array<i64: 8, 1>}, {pipeline_mode = #tpu.pipeline_mode<synchronous>, transform_indices = @transform_6, window_bounds = array<i64: 32, 8>}, {pipeline_mode = #tpu.pipeline_mode<synchronous>, transform_indices = @transform_7, window_bounds = array<i64: 32, 1>}, {pipeline_mode = #tpu.pipeline_mode<synchronous>, transform_indices = @transform_8, window_bounds = array<i64: 32, 768>}]} {
    %c0 = arith.constant 0 : index
    %c0_0 = arith.constant 0 : index
    %0 = vector.load %arg3[%c0, %c0_0] : memref<8x16xbf16, #tpu.memory_space<vmem>>, vector<8x16xbf16>
    %c0_1 = arith.constant 0 : index
    %c0_2 = arith.constant 0 : index
    %1 = vector.load %arg1[%c0_1, %c0_2] : memref<16x768xbf16, #tpu.memory_space<vmem>>, vector<16x768xbf16>
    %cst = arith.constant dense<0.000000e+00> : vector<8x768xf32>
    %2 = tpu.matmul %0, %1, %cst {dimension_numbers = #tpu.dot_dimension_numbers<[1], [0], [0], [1], [0, 0, 1, 1], [], []>} : vector<8x16xbf16>, vector<16x768xbf16>, vector<8x768xf32> -> vector<8x768xf32>
    %c0_3 = arith.constant 0 : index
    %c0_4 = arith.constant 0 : index
    %3 = vector.load %arg4[%c0_3, %c0_4] : memref<8x1xf32, #tpu.memory_space<vmem>>, vector<8x1xf32>
    %4 = vector.broadcast %3 : vector<8x1xf32> to vector<8x768xf32>
    %5 = arith.addf %2, %4 : vector<8x768xf32>
    %cst_5 = arith.constant 0.000000e+00 : f32
    %6 = vector.broadcast %cst_5 : f32 to vector<8x768xf32>
    %7 = arith.maximumf %5, %6 : vector<8x768xf32>
    %c0_6 = arith.constant 0 : index
    %c0_7 = arith.constant 0 : index
    %8 = vector.load %arg2[%c0_6, %c0_7] : memref<1x768xf32, #tpu.memory_space<vmem>>, vector<1x768xf32>
    %9 = vector.broadcast %8 : vector<1x768xf32> to vector<8x768xf32>
    %10 = arith.mulf %7, %9 : vector<8x768xf32>
    %c19_i32 = arith.constant 19 : i32
    %11 = tpu.dynamic_rotate %10 by %c19_i32 dim 1 : vector<8x768xf32>, i32 -> vector<8x768xf32>
    %c18_i32 = arith.constant 18 : i32
    %12 = tpu.dynamic_rotate %10 by %c18_i32 dim 1 : vector<8x768xf32>, i32 -> vector<8x768xf32>
    %c17_i32 = arith.constant 17 : i32
    %13 = tpu.dynamic_rotate %10 by %c17_i32 dim 1 : vector<8x768xf32>, i32 -> vector<8x768xf32>
    %c1_i32 = arith.constant 1 : i32
    %14 = tpu.dynamic_rotate %10 by %c1_i32 dim 1 : vector<8x768xf32>, i32 -> vector<8x768xf32>
    %c767_i32 = arith.constant 767 : i32
    %15 = tpu.dynamic_rotate %10 by %c767_i32 dim 1 : vector<8x768xf32>, i32 -> vector<8x768xf32>
    %c751_i32 = arith.constant 751 : i32
    %16 = tpu.dynamic_rotate %10 by %c751_i32 dim 1 : vector<8x768xf32>, i32 -> vector<8x768xf32>
    %c750_i32 = arith.constant 750 : i32
    %17 = tpu.dynamic_rotate %10 by %c750_i32 dim 1 : vector<8x768xf32>, i32 -> vector<8x768xf32>
    %c749_i32 = arith.constant 749 : i32
    %18 = tpu.dynamic_rotate %10 by %c749_i32 dim 1 : vector<8x768xf32>, i32 -> vector<8x768xf32>
    %19 = tpu.concatenate %11, %12, %13, %14, %10, %15, %16, %17, %18 in 0 : vector<8x768xf32>, vector<8x768xf32>, vector<8x768xf32>, vector<8x768xf32>, vector<8x768xf32>, vector<8x768xf32>, vector<8x768xf32>, vector<8x768xf32>, vector<8x768xf32> -> vector<72x768xf32>
    %20 = arith.truncf %19 : vector<72x768xf32> to vector<72x768xbf16>
    %c0_8 = arith.constant 0 : index
    %c0_9 = arith.constant 0 : index
    %21 = vector.load %arg5[%c0_8, %c0_9] : memref<8x72xbf16, #tpu.memory_space<vmem>>, vector<8x72xbf16>
    %cst_10 = arith.constant dense<0.000000e+00> : vector<8x768xf32>
    %22 = tpu.matmul %21, %20, %cst_10 {dimension_numbers = #tpu.dot_dimension_numbers<[1], [0], [0], [1], [0, 0, 1, 1], [], []>} : vector<8x72xbf16>, vector<72x768xbf16>, vector<8x768xf32> -> vector<8x768xf32>
    %c0_11 = arith.constant 0 : index
    %c0_12 = arith.constant 0 : index
    %23 = vector.load %arg6[%c0_11, %c0_12] : memref<8x1xf32, #tpu.memory_space<vmem>>, vector<8x1xf32>
    %24 = vector.broadcast %23 : vector<8x1xf32> to vector<8x768xf32>
    %25 = arith.addf %22, %24 : vector<8x768xf32>
    %cst_13 = arith.constant 0.000000e+00 : f32
    %26 = vector.broadcast %cst_13 : f32 to vector<8x768xf32>
    %27 = arith.maximumf %25, %26 : vector<8x768xf32>
    %28 = arith.truncf %27 : vector<8x768xf32> to vector<8x768xbf16>
    %c0_14 = arith.constant 0 : index
    %c0_15 = arith.constant 0 : index
    %29 = vector.load %arg7[%c0_14, %c0_15] : memref<32x8xbf16, #tpu.memory_space<vmem>>, vector<32x8xbf16>
    %cst_16 = arith.constant dense<0.000000e+00> : vector<32x768xf32>
    %30 = tpu.matmul %29, %28, %cst_16 {dimension_numbers = #tpu.dot_dimension_numbers<[1], [0], [0], [1], [0, 0, 1, 1], [], []>} : vector<32x8xbf16>, vector<8x768xbf16>, vector<32x768xf32> -> vector<32x768xf32>
    %c0_17 = arith.constant 0 : index
    %c0_18 = arith.constant 0 : index
    %31 = vector.load %arg8[%c0_17, %c0_18] : memref<32x1xf32, #tpu.memory_space<vmem>>, vector<32x1xf32>
    %32 = vector.broadcast %31 : vector<32x1xf32> to vector<32x768xf32>
    %33 = arith.addf %30, %32 : vector<32x768xf32>
    %cst_19 = arith.constant 0.000000e+00 : f32
    %34 = vector.broadcast %cst_19 : f32 to vector<32x768xf32>
    %35 = arith.maximumf %33, %34 : vector<32x768xf32>
    %c0_20 = arith.constant 0 : index
    %c0_21 = arith.constant 0 : index
    %36 = vector.load %arg9[%c0_20, %c0_21] : memref<32x768xf32, #tpu.memory_space<vmem>>, vector<32x768xf32>
    tpu.vector_store %arg9[%c0_20, %c0_21], %35 {strides = array<i32>} : memref<32x768xf32, #tpu.memory_space<vmem>>, vector<32x768xf32>,
    return
  }
  func.func @transform_0(%arg0: i32) -> (i32, i32) {
    %c0_i32 = arith.constant 0 : i32
    %c0_i32_0 = arith.constant 0 : i32
    %c0_i32_1 = arith.constant 0 : i32
    return %c0_i32, %c0_i32_0 : i32, i32
  }
  func.func @transform_1(%arg0: i32) -> (i32, i32) {
    %c0_i32 = arith.constant 0 : i32
    %c0_i32_0 = arith.constant 0 : i32
    %c0_i32_1 = arith.constant 0 : i32
    return %c0_i32, %c0_i32_0 : i32, i32
  }
  func.func @transform_2(%arg0: i32) -> (i32, i32) {
    %c0_i32 = arith.constant 0 : i32
    %c0_i32_0 = arith.constant 0 : i32
    %c0_i32_1 = arith.constant 0 : i32
    return %c0_i32, %c0_i32_0 : i32, i32
  }
  func.func @transform_3(%arg0: i32) -> (i32, i32) {
    %c0_i32 = arith.constant 0 : i32
    %c0_i32_0 = arith.constant 0 : i32
    %c0_i32_1 = arith.constant 0 : i32
    return %c0_i32, %c0_i32_0 : i32, i32
  }
  func.func @transform_4(%arg0: i32) -> (i32, i32) {
    %c0_i32 = arith.constant 0 : i32
    %c0_i32_0 = arith.constant 0 : i32
    %c0_i32_1 = arith.constant 0 : i32
    return %c0_i32, %c0_i32_0 : i32, i32
  }
  func.func @transform_5(%arg0: i32) -> (i32, i32) {
    %c0_i32 = arith.constant 0 : i32
    %c0_i32_0 = arith.constant 0 : i32
    %c0_i32_1 = arith.constant 0 : i32
    return %c0_i32, %c0_i32_0 : i32, i32
  }
  func.func @transform_6(%arg0: i32) -> (i32, i32) {
    %c0_i32 = arith.constant 0 : i32
    %c0_i32_0 = arith.constant 0 : i32
    %c0_i32_1 = arith.constant 0 : i32
    return %c0_i32, %c0_i32_0 : i32, i32
  }
  func.func @transform_7(%arg0: i32) -> (i32, i32) {
    %c0_i32 = arith.constant 0 : i32
    %c0_i32_0 = arith.constant 0 : i32
    %c0_i32_1 = arith.constant 0 : i32
    return %c0_i32, %c0_i32_0 : i32, i32
  }
  func.func @transform_8(%arg0: i32) -> (i32, i32) {
    %c0_i32 = arith.constant 0 : i32
    %c0_i32_0 = arith.constant 0 : i32
    %c0_i32_1 = arith.constant 0 : i32
    return %c0_i32, %c0_i32_0 : i32, i32
  }
}

</mosaic_0001>

<bundles_post_ra>
// kernel: tpu_custom_call.1
= control target key start
LH: loop header
LB: loop body
LE: loop exit
PB: predicated region body
PF: predicated region fallthrough
CT: control target
= control target key end

     0   :  { %v1058_v2 = vmov 0   ;;  %vm74_vm0 = vcmask 130048   ;;  %s1507_s0 = inlined_call_operand.vmem [shape: bf16[16,768], index: 0, kind: input, shape index: {}]   ;;  %s1508_s1 = inlined_call_operand.vmem [shape: f32[1,768], index: 1, kind: input, shape index: {}]   ;;  %s1509_s2 = inlined_call_operand.vmem [shape: bf16[8,16], index: 2, kind: input, shape index: {}]   ;;  %s1510_s3 = inlined_call_operand.vmem [shape: f32[8,1], index: 3, kind: input, shape index: {}]   ;;  %s1511_s4 = inlined_call_operand.vmem [shape: bf16[8,72], index: 4, kind: input, shape index: {}]   ;;  %s1512_s5 = inlined_call_operand.vmem [shape: f32[8,1], index: 5, kind: input, shape index: {}]   ;;  %s1513_s6 = inlined_call_operand.vmem [shape: bf16[32,8], index: 6, kind: input, shape index: {}]   ;;  %s1514_s7 = inlined_call_operand.vmem [shape: f32[32,1], index: 7, kind: input, shape index: {}]   ;;  %s1515_s8 = inlined_call_operand.hbm [shape: f32[32,768], index: 8, kind: output, shape index: {}]  }
   0x1   :  { %v1025_v0 = vld [vmem:[%s1507_s0 + $0x4] ss:$24 sps:$4 sm:$0xff]   ;;  %110 = vmatprep.mubr.bf16.mxu0 %v1058_v2  ;;  %151 = vmatprep.mubr.bf16.mxu1 %v1058_v2  ;;  %v1029_v3 = vld [vmem:[%s1507_s0] ss:$24 sps:$4 sm:$0xff]   ;;  %v1031_v6 = vld [vmem:[%s1507_s0 + $0x10] ss:$24 sps:$4 sm:$0xff]  }
   0x2   :  { %v1027_v1 = vld [vmem:[%s1507_s0 + $0xc] ss:$24 sps:$4 sm:$0xff]   ;;  %92 = vmatprep.subr.bf16.mxu0 %v1025_v0  ;;  %v1030_v4 = vld [vmem:[%s1507_s0 + $0x8] ss:$24 sps:$4 sm:$0xff]   ;;  %918 = vset.pattern.permute.xlu0 %v1058_v2 }
   0x3   :  { %v31_v5 = vld [vmem:[%s1509_s2] sm:$0xf]  ;;  %133 = vmatprep.subr.bf16.mxu1 %v1027_v1  ;;  %1024 = vset.pattern.permute.xlu1 %v1058_v2  ;;  %v1033_v7 = vld [vmem:[%s1507_s0 + $0x14] ss:$24 sps:$4 sm:$0xff]  }
   0x4   :  { %93 = vmatpush1.bf16.msra.mxu0 %v1029_v3  ;;  %134 = vmatpush1.bf16.msra.mxu1 %v1030_v4  ;;  %v38_v8 = vld [vmem:[%s1510_s3] sm:$0xff] }
   0x5   :  { %41 = vperm.xlu0 %918, %v38_v8   ;;  %174 = vmatprep.subr.bf16.mxu0 %v1033_v7 }
   0x6   :  { %13 = vsyncpa [#allocation3], 0  ;;  %v209_v9 = vlaneseq  ;;  %v207_v16 = vld [vmem:[%s1508_s1] sm:$0x3f]  ;;  %s1059_s1 = smov 109   ;;  %s1060_s3 = smov 111  }
   0x7   :  { %886 = vmatmul.mubr.msk.bf16.vlgmr.msra.gmra.mxu0 %vm74_vm0, %v31_v5  ;;  %887 = vmatmul.mubr.msk.bf16.vlgmr.msra.gmra.mxu1 %vm74_vm0, %v31_v5  ;;  %s1061_s21 = smov 110   ;;  %s1062_s22 = smov 127   ;;  %v430_v62 = vld [vmem:[%s1512_s5] sm:$0xff]  ;;  %v599_v63 = vld [vmem:[%s1514_s7 + $0x8] sm:$0xff]  ;;  %v601_v0 = vld [vmem:[%s1514_s7 + $0x18] sm:$0xff]  ;;  %vm440_vm2 = vcmask 1043456  }
   0x8   :  { %175 = vmatpush1.bf16.msra.mxu0 %v1031_v6  ;;  %192 = vmatprep.mubr.bf16.mxu0 %v1058_v2  ;;  %v210_v10 = vshrl.u32 %v209_v9, 7  ;;  %s1063_s23 = smov 17   ;;  %s1064_s24 = smov 1   ;;  %v1204_v1 = vand.u32 127, %v209_v9  ;;  %vm436_vm10 = vcmask 588800   ;;  %vm632_vm11 = vcmask 64512  }
   0x9   :  { %491 = vmatprep.mubr.bf16.mxu1 %v1058_v2  ;;  %s1065_s25 = smov 19   ;;  %s1066_s26 = smov 18  }
   0xa   :  { %v211_v11 = vsub.s32 0, %v210_v10  ;;  %v219_v13 = vsub.s32 2, %v210_v10  ;;  %v215_v14 = vsub.s32 1, %v210_v10  ;;  %v223_v15 = vsub.s32 3, %v210_v10 }
   0xb   :  { %v227_v49 = vsub.s32 4, %v210_v10  ;;  %v231_v52 = vsub.s32 5, %v210_v10  ;;  %vm392_vm1 = vcmp.lt.s32.totalorder %v1204_v1, 109  ;;  %vm354_vm3 = vcmp.lt.s32.totalorder %v1204_v1, 111 }
   0xc   :  { %v212_v20 = vrot.slane %v207_v16, %v211_v11  ;;  %v220_v22 = vrot.slane %v207_v16, %v219_v13  ;;  %v216_v24 = vrot.slane %v207_v16, %v215_v14  ;;  %v224_v26 = vrot.slane %v207_v16, %v223_v15 }
   0xd   :  { %v228_v51 = vrot.slane %v207_v16, %v227_v49  ;;  %v232_v55 = vrot.slane %v207_v16, %v231_v52  ;;  %vm373_vm4 = vcmp.lt.s32.totalorder %v1204_v1, 110  ;;  %vm335_vm5 = vcmp.lt.s32.totalorder %v1204_v1, 127 }
   0xe   :  { %vm297_vm6 = vcmp.lt.s32.totalorder %v1204_v1, 17  ;;  %vm316_vm7 = vcmp.lt.s32.totalorder %v1204_v1, 1  ;;  %vm278_vm8 = vcmp.lt.s32.totalorder %v1204_v1, 18  ;;  %vm259_vm9 = vcmp.lt.s32.totalorder %v1204_v1, 19  ;;  %v600_v1 = vld [vmem:[%s1514_s7 + $0x10] sm:$0xff] }
   0xf   :  { %888 = vmatmul.mubr.msk.bf16.vlgmr.msra.gmra.mxu0 %vm74_vm0, %v31_v5 }
  0x10   :  { %532 = vmatprep.mubr.bf16.mxu0 %v1058_v2 }
  0x80   :  { %v42_v12 = vpop.permute.xlu0 %41 }
  0xc7   :  { %v112_v17 = vpop.f32.mrf.mxu0  ;;  %v153_v18 = vpop.f32.mrf.mxu1 }
  0xc8   :  { %v113_v19 = vadd.f32 %v112_v17, %v42_v12  ;;  %v154_v21 = vadd.f32 %v153_v18, %v42_v12 }
  0xc9   :  { %v114_v23 = vpop.f32.mrf.mxu0  ;;  %v155_v25 = vpop.f32.mrf.mxu1 }
  0xca   :  { %v201_v27 = vmax.f32 %v113_v19, 0.0  ;;  %v203_v28 = vmax.f32 %v154_v21, 0.0  ;;  %v115_v29 = vadd.f32 %v114_v23, %v42_v12  ;;  %v156_v30 = vadd.f32 %v155_v25, %v42_v12 }
  0xcb   :  { %v116_v31 = vpop.f32.mrf.mxu0  ;;  %v157_v32 = vpop.f32.mrf.mxu1 }
  0xcc   :  { %v1150_v33 = vmul.f32 %v212_v20, %v201_v27  ;;  %v202_v34 = vmax.f32 %v115_v29, 0.0  ;;  %v204_v35 = vmax.f32 %v156_v30, 0.0  ;;  %v1152_v38 = vmul.f32 %v220_v22, %v203_v28 }
  0xcd   :  { %v117_v36 = vpop.f32.mrf.mxu0  ;;  %v158_v37 = vpop.f32.mrf.mxu1 }
  0xce   :  { %v1154_v39 = vmul.f32 %v216_v24, %v202_v34  ;;  %v1156_v40 = vmul.f32 %v224_v26, %v204_v35 }
  0xcf   :  { %v194_v41 = vpop.f32.mrf.mxu0 }
  0xd0   :  { %v924_v42 = vpack.i.bf16 %v1156_v40, %v1152_v38  ;;  %v919_v43 = vpack.i.bf16 %v1154_v39, %v1150_v33  ;;  %v929_v46 = vpack.i.bf16 %v1152_v38, %v1154_v39  ;;  %v939_v48 = vpack.i.bf16 %v1156_v40, %v1150_v33 }
  0xd1   :  { %v196_v44 = vpop.f32.mrf.mxu0  ;;  %v195_v50 = vadd.f32 %v194_v41, %v42_v12 }
  0xd2   :  { %925 = vrot.lane.b32.xlu1 %v924_v42, %s1059_s1  ;;  %920 = vrot.lane.b32.xlu0 %v919_v43, %s1059_s1  ;;  %v197_v54 = vadd.f32 %v196_v44, %v42_v12 }
  0xd3   :  { %v198_v45 = vpop.f32.mrf.mxu0  ;;  %v205_v53 = vmax.f32 %v195_v50, 0.0 }
  0xd4   :  { %v206_v57 = vmax.f32 %v197_v54, 0.0 }
  0xd5   :  { %v199_v47 = vpop.f32.mrf.mxu0  ;;  %v1174_v56 = vmul.f32 %v228_v51, %v205_v53 }
  0xd6   :  { %930 = vrot.lane.b32.xlu1 %v929_v46, %s1060_s3  ;;  %935 = vrot.lane.b32.xlu0 %v929_v46, %s1061_s21  ;;  %v1176_v58 = vmul.f32 %v232_v55, %v206_v57 }
  0xd7   :  { %v979_v59 = vpack.i.bf16 %v1174_v56, %v1156_v40 }
  0xd8   :  { %v984_v60 = vpack.i.bf16 %v1152_v38, %v1176_v58  ;;  %v994_v61 = vpack.i.bf16 %v1176_v58, %v1174_v56 }
  0xda   :  { %940 = vrot.lane.b32.xlu1 %v939_v48, %s1060_s3  ;;  %945 = vrot.lane.b32.xlu0 %v939_v48, %s1061_s21 }
  0xde   :  { %950 = vrot.lane.b32.xlu1 %v929_v46, %s1062_s22  ;;  %955 = vrot.lane.b32.xlu0 %v939_v48, %s1062_s22 }
  0xe2   :  { %960 = vrot.lane.b32.xlu1 %v919_v43, %s1063_s23  ;;  %965 = vrot.lane.b32.xlu0 %v919_v43, %s1064_s24 }
  0xe6   :  { %970 = vrot.lane.b32.xlu1 %v919_v43, %s1065_s25  ;;  %975 = vrot.lane.b32.xlu0 %v919_v43, %s1066_s26 }
  0xea   :  { %980 = vrot.lane.b32.xlu1 %v979_v59, %s1063_s23  ;;  %314 = vrot.lane.b32.xlu0 %v1176_v58, %s1064_s24 }
  0xee   :  { %985 = vrot.lane.b32.xlu1 %v984_v60, %s1063_s23  ;;  %276 = vrot.lane.b32.xlu0 %v1176_v58, %s1066_s26 }
  0xf2   :  { %255 = vrot.lane.b32.xlu1 %v1176_v58, %s1065_s25  ;;  %990 = vrot.lane.b32.xlu0 %v924_v42, %s1064_s24 }
  0xf6   :  { %995 = vrot.lane.b32.xlu1 %v994_v61, %s1059_s1  ;;  %1000 = vrot.lane.b32.xlu0 %v994_v61, %s1060_s3 }
  0xfa   :  { %1005 = vrot.lane.b32.xlu1 %v994_v61, %s1061_s21  ;;  %1010 = vrot.lane.b32.xlu0 %v994_v61, %s1062_s22 }
  0xfe   :  { %312 = vrot.lane.b32.xlu1 %v1174_v56, %s1064_s24  ;;  %1015 = vrot.lane.b32.xlu0 %v924_v42, %s1065_s25 }
 0x102   :  { %253 = vrot.lane.b32.xlu1 %v1174_v56, %s1065_s25  ;;  %1020 = vrot.lane.b32.xlu0 %v924_v42, %s1066_s26 }
 0x106   :  { %274 = vrot.lane.b32.xlu1 %v1174_v56, %s1066_s26  ;;  %433 = vperm.xlu0 %918, %v430_v62  }
 0x10a   :  { %609 = vperm.xlu0 %918, %v599_v63  }
 0x10e   :  { %619 = vperm.xlu0 %918, %v601_v0  }
 0x144   :  { %v1206_v3 = vpop.permute.xlu1 %925  ;;  %v1209_v4 = vpop.permute.xlu0 %920 }
 0x145   :  { %v927_v5 = vunpack.i.l.bf16 %v1206_v3  ;;  %v923_v6 = vunpack.i.h.bf16 %v1209_v4  ;;  %v922_v7 = vunpack.i.l.bf16 %v1209_v4  ;;  %v928_v59 = vunpack.i.h.bf16 %v1206_v3 }
 0x147   :  { %v396_v8 = vsel %vm392_vm1, %v923_v6, %v927_v5  ;;  %v397_v9 = vsel %vm392_vm1, %v922_v7, %v923_v6 }
 0x148   :  { %v424_v10 = vpack.c.bf16 %v396_v8, %v396_v8  ;;  %v1222_v11 = vpop.permute.xlu1 %930  ;;  %v1224_v12 = vpop.permute.xlu0 %935  ;;  %v423_v13 = vpack.c.bf16 %v397_v9, %v397_v9  ;;  %v395_v9 = vsel %vm392_vm1, %v927_v5, %v928_v59 }
 0x149   :  { %v933_v14 = vunpack.i.h.bf16 %v1222_v11  ;;  %v932_v15 = vunpack.i.l.bf16 %v1222_v11  ;;  %v938_v16 = vunpack.i.h.bf16 %v1224_v12  ;;  %v937_v17 = vunpack.i.l.bf16 %v1224_v12 }
 0x14a   :  { %889 = vmatprep.subr.msk.bf16.mxu1 %vm440_vm2, %v424_v10  ;;  %v442_v18 = vsel %vm440_vm2, %v423_v13, 0 }
 0x14b   :  { %466 = vmatpush1.bf16.msra.mxu1 %v442_v18  ;;  %v358_v19 = vsel %vm354_vm3, %v932_v15, %v933_v14  ;;  %v377_v20 = vsel %vm373_vm4, %v937_v17, %v938_v16 }
 0x14c   :  { %v1242_v21 = vpop.permute.xlu1 %940  ;;  %v1244_v22 = vpop.permute.xlu0 %945  ;;  %v418_v23 = vpack.c.bf16 %v377_v20, %v358_v19  ;;  %v425_v20 = vpack.c.bf16 %v395_v9, %v395_v9 }
 0x14d   :  { %v942_v24 = vunpack.i.l.bf16 %v1242_v21  ;;  %v947_v25 = vunpack.i.l.bf16 %v1244_v22  ;;  %v943_v19 = vunpack.i.h.bf16 %v1242_v21 }
 0x14e   :  { %467 = vmatprep.subr.bf16.mxu1 %v418_v23 }
 0x14f   :  { %v359_v26 = vsel %vm354_vm3, %v942_v24, %v932_v15  ;;  %v378_v27 = vsel %vm373_vm4, %v947_v25, %v937_v17 }
 0x150   :  { %v417_v28 = vpack.c.bf16 %v378_v27, %v359_v26  ;;  %v1256_v29 = vpop.permute.xlu1 %950  ;;  %v1259_v30 = vpop.permute.xlu0 %955  ;;  %v948_v27 = vunpack.i.h.bf16 %v1244_v22 }
 0x151   :  { %v953_v31 = vunpack.i.h.bf16 %v1256_v29  ;;  %v952_v32 = vunpack.i.l.bf16 %v1256_v29  ;;  %v957_v34 = vunpack.i.l.bf16 %v1259_v30 }
 0x152   :  { %468 = vmatpush1.bf16.msra.mxu1 %v417_v28  ;;  %v958_v28 = vunpack.i.h.bf16 %v1259_v30 }
 0x153   :  { %v340_v35 = vsel %vm335_vm5, %v957_v34, %v952_v32  ;;  %v339_v36 = vsel %vm335_vm5, %v952_v32, %v953_v31 }
 0x154   :  { %v411_v37 = vpack.c.bf16 %v340_v35, %v1150_v33  ;;  %v1273_v41 = vpop.permute.xlu1 %960  ;;  %v1275_v42 = vpop.permute.xlu0 %965  ;;  %v412_v43 = vpack.c.bf16 %v339_v36, %v1154_v39  ;;  %v357_v36 = vsel %vm354_vm3, %v933_v14, %v943_v19  ;;  %v338_v4 = vsel %vm335_vm5, %v953_v31, %v958_v28 }
 0x155   :  { %v963_v44 = vunpack.i.h.bf16 %v1273_v41  ;;  %v962_v45 = vunpack.i.l.bf16 %v1273_v41  ;;  %v968_v46 = vunpack.i.h.bf16 %v1275_v42  ;;  %v967_v47 = vunpack.i.l.bf16 %v1275_v42 }
 0x156   :  { %469 = vmatprep.subr.bf16.mxu1 %v412_v43  ;;  %v448_v43 = vsel %vm440_vm2, %v425_v20, 0 }
 0x157   :  { %470 = vmatpush1.bf16.msra.mxu1 %v411_v37  ;;  %v302_v33 = vsel %vm297_vm6, %v962_v45, %v963_v44  ;;  %v321_v39 = vsel %vm316_vm7, %v967_v47, %v968_v46  ;;  %v1351_v37 = vld [vmem:[%s1511_s4] sm:$0xf] }
 0x158   :  { %v1292_v48 = vpop.permute.xlu1 %970  ;;  %v1294_v49 = vpop.permute.xlu0 %975  ;;  %v406_v50 = vpack.c.bf16 %v321_v39, %v302_v33 }
 0x159   :  { %v973_v53 = vunpack.i.h.bf16 %v1292_v48  ;;  %v972_v54 = vunpack.i.l.bf16 %v1292_v48  ;;  %v978_v55 = vunpack.i.h.bf16 %v1294_v49  ;;  %v977_v57 = vunpack.i.l.bf16 %v1294_v49  ;;  %v598_v48 = vld [vmem:[%s1514_s7] sm:$0xff] }
 0x15a   :  { %471 = vmatprep.subr.bf16.mxu1 %v406_v50  ;;  %604 = vperm.xlu1 %1024, %v598_v48  }
 0x15b   :  { %v264_v63 = vsel %vm259_vm9, %v972_v54, %v973_v53  ;;  %v283_v0 = vsel %vm278_vm8, %v977_v57, %v978_v55 }
 0x15c   :  { %v1296_v51 = vpop.permute.xlu1 %980  ;;  %v1298_v52 = vpop.permute.xlu0 %314  ;;  %v400_v18 = vpack.c.bf16 %v283_v0, %v264_v63 }
 0x15d   :  { %v322_v6 = vsel %vm316_vm7, %v1298_v52, %v967_v47 }
 0x15e   :  { %614 = vperm.xlu1 %1024, %v600_v1  }
 0x160   :  { %v1307_v60 = vpop.permute.xlu1 %985  ;;  %v1309_v61 = vpop.permute.xlu0 %276 }
 0x161   :  { %v987_v62 = vunpack.i.l.bf16 %v1307_v60  ;;  %v284_v3 = vsel %vm278_vm8, %v1309_v61, %v977_v57 }
 0x163   :  { %v303_v8 = vsel %vm297_vm6, %v987_v62, %v962_v45 }
 0x164   :  { %v405_v10 = vpack.c.bf16 %v322_v6, %v303_v8  ;;  %v1331_v13 = vpop.permute.xlu1 %255  ;;  %v1333_v15 = vpop.permute.xlu0 %990 }
 0x165   :  { %v265_v17 = vsel %vm259_vm9, %v1331_v13, %v972_v54  ;;  %v993_v6 = vunpack.i.h.bf16 %v1333_v15  ;;  %v992_v8 = vunpack.i.l.bf16 %v1333_v15  ;;  %v988_v15 = vunpack.i.h.bf16 %v1307_v60 }
 0x166   :  { %472 = vmatpush1.bf16.msra.mxu1 %v405_v10  ;;  %v399_v5 = vpack.c.bf16 %v284_v3, %v265_v17 }
 0x167   :  { %473 = vmatprep.subr.bf16.mxu1 %v400_v18  ;;  %v301_v42 = vsel %vm297_vm6, %v963_v44, %v988_v15 }
 0x168   :  { %v996_v23 = vpop.permute.xlu1 %995  ;;  %v1001_v26 = vpop.permute.xlu0 %1000 }
 0x169   :  { %v998_v32 = vunpack.i.h.bf16 %v996_v23  ;;  %v997_v35 = vunpack.i.l.bf16 %v996_v23  ;;  %v1002_v47 = vunpack.i.l.bf16 %v1001_v26  ;;  %v1003_v50 = vunpack.i.h.bf16 %v1001_v26 }
 0x16a   :  { %474 = vmatpush1.bf16.msra.mxu1 %v399_v5 }
 0x16b   :  { %v394_v45 = vsel %vm392_vm1, %v928_v59, %v997_v35  ;;  %v398_v11 = vsel %vm392_vm1, %v998_v32, %v922_v7  ;;  %v393_v14 = vsel %vm392_vm1, %v997_v35, %v998_v32  ;;  %v376_v59 = vsel %vm373_vm4, %v938_v16, %v948_v27 }
 0x16c   :  { %v426_v33 = vpack.c.bf16 %v394_v45, %v394_v45  ;;  %v428_v39 = vpack.c.bf16 %v398_v11, %v398_v11  ;;  %v1006_v54 = vpop.permute.xlu1 %1005  ;;  %v1011_v57 = vpop.permute.xlu0 %1010  ;;  %v427_v63 = vpack.c.bf16 %v393_v14, %v393_v14  ;;  %v356_v31 = vsel %vm354_vm3, %v943_v19, %v1002_v47 }
 0x16d   :  { %v1008_v7 = vunpack.i.h.bf16 %v1006_v54  ;;  %v1007_v0 = vunpack.i.l.bf16 %v1006_v54  ;;  %890 = vmatmul.mubr.msk.bf16.vlgmr.msra.gmra.mxu1 %vm436_vm10, %v1351_v37  ;;  %v1012_v9 = vunpack.i.l.bf16 %v1011_v57  ;;  %v1013_v29 = vunpack.i.h.bf16 %v1011_v57 }
 0x16e   :  { %891 = vmatprep.subr.msk.bf16.mxu0 %vm440_vm2, %v426_v33  ;;  %893 = vmatprep.subr.msk.bf16.mxu1 %vm440_vm2, %v428_v39  ;;  %v454_v12 = vsel %vm440_vm2, %v427_v63, 0  ;;  %v355_v17 = vsel %vm354_vm3, %v1002_v47, %v1003_v50  ;;  %v419_v23 = vpack.c.bf16 %v376_v59, %v357_v36  ;;  %v360_v26 = vsel %vm354_vm3, %v1003_v50, %v942_v24 }
 0x16f   :  { %v374_v16 = vsel %vm373_vm4, %v1007_v0, %v1008_v7  ;;  %507 = vmatpush1.bf16.msra.mxu0 %v448_v43  ;;  %548 = vmatpush1.bf16.msra.mxu1 %v454_v12  ;;  %v375_v10 = vsel %vm373_vm4, %v948_v27, %v1007_v0  ;;  %v379_v5 = vsel %vm373_vm4, %v1008_v7, %v947_v25  ;;  %v982_v32 = vunpack.i.l.bf16 %v1296_v51 }
 0x170   :  { %v313_v18 = vpop.permute.xlu1 %312  ;;  %v1016_v20 = vpop.permute.xlu0 %1015  ;;  %v420_v3 = vpack.c.bf16 %v375_v10, %v356_v31  ;;  %573 = vmatprep.mubr.bf16.mxu1 %v1058_v2  ;;  %v421_v19 = vpack.c.bf16 %v374_v16, %v355_v17  ;;  %v413_v27 = vpack.c.bf16 %v338_v4, %v1152_v38  ;;  %v422_v35 = vpack.c.bf16 %v379_v5, %v360_v26  ;;  %v1034_v17 = vld [vmem:[%s1513_s6] sm:$0xff]  }
 0x171   :  { %v337_v22 = vsel %vm335_vm5, %v958_v28, %v1012_v9  ;;  %v983_v25 = vunpack.i.h.bf16 %v1296_v51  ;;  %v341_v21 = vsel %vm335_vm5, %v1013_v29, %v957_v34  ;;  %v319_v38 = vsel %vm316_vm7, %v992_v8, %v993_v6 }
 0x172   :  { %508 = vmatprep.subr.bf16.mxu0 %v420_v3  ;;  %v414_v36 = vpack.c.bf16 %v337_v22, %v1156_v40  ;;  %v336_v24 = vsel %vm335_vm5, %v1012_v9, %v1013_v29  ;;  %v317_v28 = vsel %vm316_vm7, %v313_v18, %v1298_v52  ;;  %549 = vmatprep.subr.bf16.mxu1 %v422_v35  ;;  %v1018_v45 = vunpack.i.h.bf16 %v1016_v20 }
 0x173   :  { %509 = vmatpush1.bf16.msra.mxu0 %v419_v23  ;;  %v416_v40 = vpack.c.bf16 %v341_v21, %v1176_v58  ;;  %v300_v30 = vsel %vm297_vm6, %v988_v15, %v982_v32  ;;  %v1017_v34 = vunpack.i.l.bf16 %v1016_v20  ;;  %550 = vmatpush1.bf16.msra.mxu1 %v421_v19  ;;  %v320_v14 = vsel %vm316_vm7, %v968_v46, %v992_v8 }
 0x174   :  { %v254_v51 = vpop.permute.xlu1 %253  ;;  %v1021_v43 = vpop.permute.xlu0 %1020  ;;  %510 = vmatprep.subr.bf16.mxu0 %v414_v36  ;;  %v408_v52 = vpack.c.bf16 %v319_v38, %v300_v30  ;;  %v415_v33 = vpack.c.bf16 %v336_v24, %v1174_v56  ;;  %v298_v58 = vsel %vm297_vm6, %v983_v25, %v987_v62  ;;  %v318_v46 = vsel %vm316_vm7, %v993_v6, %v313_v18  ;;  %v1035_v18 = vld [vmem:[%s1513_s6 + $0x8] sm:$0xff]   ;;  %s1067_s6 = smov [#allocation2]  }
 0x175   :  { %v1023_v11 = vunpack.i.h.bf16 %v1021_v43  ;;  %v1022_v47 = vunpack.i.l.bf16 %v1021_v43  ;;  %551 = vmatprep.subr.bf16.mxu1 %v416_v40  ;;  %v410_v50 = vpack.c.bf16 %v317_v28, %v298_v58  ;;  %v407_v56 = vpack.c.bf16 %v320_v14, %v301_v42  ;;  %s869_s18 = sshll.u32 %s1067_s6, 4  ;;  %s870_s18 = int_to_ptr.vmem [resolvable:$true] %s869_s18 }
 0x176   :  { %v260_v60 = vsel %vm259_vm9, %v254_v51, %v1331_v13  ;;  %v262_v41 = vsel %vm259_vm9, %v1017_v34, %v1018_v45  ;;  %v299_v44 = vsel %vm297_vm6, %v982_v32, %v983_v25  ;;  %v261_v49 = vsel %vm259_vm9, %v1018_v45, %v254_v51  ;;  %s1036_s19 = scalar_lea.vmem %s870_s18, 3072  ;;  %p1041_p1 = scmp.lt.s32.totalorder %s870_s18, %s870_s18 }
 0x177   :  { %511 = vmatpush1.bf16.msra.mxu0 %v413_v27  ;;  %v281_v39 = vsel %vm278_vm8, %v1022_v47, %v1023_v11  ;;  %552 = vmatpush1.bf16.msra.mxu1 %v415_v33  ;;  %v282_v57 = vsel %vm278_vm8, %v978_v55, %v1022_v47  ;;  %v409_v13 = vpack.c.bf16 %v318_v46, %v299_v44  ;;  %p1037_p0 = scmp.ne.s32.totalorder %s870_s18, %s1036_s19  ;;  %p1042_p2 = scmp.lt.s32.totalorder %s1036_s19, %s1036_s19 }
 0x178   :  { %v275_v54 = vpop.permute.xlu1 %274  ;;  %512 = vmatprep.subr.bf16.mxu0 %v408_v52  ;;  %553 = vmatprep.subr.bf16.mxu1 %v410_v50  ;;  %v402_v59 = vpack.c.bf16 %v281_v39, %v262_v41 }
 0x179   :  { %v279_v62 = vsel %vm278_vm8, %v275_v54, %v1309_v61  ;;  %v263_v61 = vsel %vm259_vm9, %v973_v53, %v1017_v34  ;;  %v280_v4 = vsel %vm278_vm8, %v1023_v11, %v275_v54  ;;  %p1043_p3 = por %p1042_p2, %p1041_p1 }
 0x17a   :  { %v404_v63 = vpack.c.bf16 %v279_v62, %v260_v60  ;;  %v401_v7 = vpack.c.bf16 %v282_v57, %v263_v61  ;;  %v403_v55 = vpack.c.bf16 %v280_v4, %v261_v49 }
 0x17b   :  { %513 = vmatpush1.bf16.msra.mxu0 %v407_v56  ;;  %554 = vmatpush1.bf16.msra.mxu1 %v409_v13  ;;  %p1044_p4 = pnand %p1043_p3, %p1037_p0 }
 0x17c   :  { %514 = vmatprep.subr.bf16.mxu0 %v402_v59  ;;  %555 = vmatprep.subr.bf16.mxu1 %v404_v63 }
 0x17f   :  { %515 = vmatpush1.bf16.msra.mxu0 %v401_v7  ;;  %556 = vmatpush1.bf16.msra.mxu1 %v403_v55 }
 0x181   :  { %v434_v53 = vpop.permute.xlu0 %433 }
 0x182   :  { %892 = vmatmul.mubr.msk.bf16.vlgmr.msra.gmra.mxu0 %vm436_vm10, %v1351_v37  ;;  %894 = vmatmul.mubr.msk.bf16.vlgmr.msra.gmra.mxu1 %vm436_vm10, %v1351_v37 }
 0x183   :  { %689 = vmatprep.mubr.bf16.mxu0 %v1058_v2  ;;  %742 = vmatprep.mubr.bf16.mxu1 %v1058_v2 }
 0x185   :  { %v610_v39 = vpop.permute.xlu0 %609 }
 0x189   :  { %v1492_v13 = vpop.permute.xlu0 %619 }
 0x1d5   :  { %v605_v11 = vpop.permute.xlu1 %604 }
 0x1d9   :  { %v1488_v56 = vpop.permute.xlu1 %614 }
 0x22d   :  { %v493_v0 = vpop.f32.mrf.mxu1 }
 0x22e   :  { %v494_v6 = vadd.f32 %v493_v0, %v434_v53 }
 0x22f   :  { %v495_v8 = vpop.f32.mrf.mxu1 }
 0x230   :  { %v582_v9 = vmax.f32 %v494_v6, 0.0  ;;  %v496_v12 = vadd.f32 %v495_v8, %v434_v53 }
 0x231   :  { %v497_v16 = vpop.f32.mrf.mxu1 }
 0x232   :  { %v588_v37 = vpack.c.bf16 %v582_v9, %v582_v9  ;;  %v583_v29 = vmax.f32 %v496_v12, 0.0 }
 0x233   :  { %v498_v31 = vpop.f32.mrf.mxu1 }
 0x234   :  { %v589_v10 = vpack.c.bf16 %v583_v29, %v583_v29  ;;  %v640_v15 = vsel %vm440_vm2, %v588_v37, 0 }
 0x236   :  { %897 = vmatprep.subr.msk.bf16.mxu0 %vm440_vm2, %v589_v10 }
 0x237   :  { %672 = vmatpush1.bf16.msra.mxu0 %v640_v15 }
 0x23a   :  { %898 = vmatmul.mubr.msk.bf16.vlgmr.msra.gmra.mxu0 %vm632_vm11, %v1034_v17 }
 0x23b   :  { %699 = vmatprep.mubr.bf16.mxu0 %v1058_v2 }
 0x242   :  { %v534_v20 = vpop.f32.mrf.mxu0  ;;  %899 = vmatmul.mubr.msk.bf16.gmra.mxu0 %vm632_vm11, %v1035_v18  ;;  %v575_v5 = vpop.f32.mrf.mxu1 }
 0x243   :  { %v535_v3 = vadd.f32 %v534_v20, %v434_v53  ;;  %795 = vmatprep.mubr.bf16.mxu0 %v1058_v2  ;;  %v576_v26 = vadd.f32 %v575_v5, %v434_v53 }
 0x244   :  { %v536_v23 = vpop.f32.mrf.mxu0  ;;  %v577_v32 = vpop.f32.mrf.mxu1 }
 0x245   :  { %v584_v19 = vmax.f32 %v535_v3, 0.0  ;;  %v537_v27 = vadd.f32 %v536_v23, %v434_v53  ;;  %v586_v25 = vmax.f32 %v576_v26, 0.0  ;;  %v578_v21 = vadd.f32 %v577_v32, %v434_v53 }
 0x246   :  { %v538_v35 = vpop.f32.mrf.mxu0  ;;  %v579_v38 = vpop.f32.mrf.mxu1 }
 0x247   :  { %v590_v22 = vpack.c.bf16 %v584_v19, %v584_v19  ;;  %v585_v36 = vmax.f32 %v537_v27, 0.0  ;;  %v592_v28 = vpack.c.bf16 %v586_v25, %v586_v25  ;;  %v587_v43 = vmax.f32 %v578_v21, 0.0 }
 0x248   :  { %v539_v24 = vpop.f32.mrf.mxu0  ;;  %v580_v40 = vpop.f32.mrf.mxu1 }
 0x249   :  { %v591_v51 = vpack.c.bf16 %v585_v36, %v585_v36  ;;  %v593_v30 = vpack.c.bf16 %v587_v43, %v587_v43  ;;  %v646_v45 = vsel %vm440_vm2, %v590_v22, 0  ;;  %v652_v34 = vsel %vm440_vm2, %v592_v28, 0 }
 0x24b   :  { %900 = vmatprep.subr.msk.bf16.mxu1 %vm440_vm2, %v591_v51  ;;  %903 = vmatprep.subr.msk.bf16.mxu0 %vm440_vm2, %v593_v30 }
 0x24c   :  { %725 = vmatpush1.bf16.msra.mxu1 %v646_v45  ;;  %778 = vmatpush1.bf16.msra.mxu0 %v652_v34 }
 0x24f   :  { %901 = vmatmul.mubr.msk.bf16.vlgmr.msra.gmra.mxu1 %vm632_vm11, %v1034_v17  ;;  %904 = vmatmul.mubr.msk.bf16.vlgmr.msra.gmra.mxu0 %vm632_vm11, %v1034_v17 }
 0x250   :  { %752 = vmatprep.mubr.bf16.mxu1 %v1058_v2  ;;  %805 = vmatprep.mubr.bf16.mxu0 %v1058_v2 }
 0x257   :  { %902 = vmatmul.mubr.msk.bf16.gmra.mxu1 %vm632_vm11, %v1035_v18  ;;  %905 = vmatmul.mubr.msk.bf16.gmra.mxu0 %vm632_vm11, %v1035_v18 }
 0x2fa   :  { %v691_v47 = vpop.f32.mrf.mxu0 }
 0x2fb   :  { %v692_v14 = vadd.f32 %v691_v47, %v605_v11 }
 0x2fc   :  { %v693_v52 = vpop.f32.mrf.mxu0 }
 0x2fd   :  { %v694_v33 = vadd.f32 %v693_v52, %v605_v11  ;;  %v816_v58 = vmax.f32 %v692_v14, 0.0 }
 0x2fe   :  { %v695_v42 = vpop.f32.mrf.mxu0 }
 0x2ff   :  { %v696_v46 = vadd.f32 %v695_v42, %v610_v39  ;;  %v817_v50 = vmax.f32 %v694_v33, 0.0  ;;  %840 = vst [vmem:[#allocation2] sm:$0xff] %v816_v58 }
 0x300   :  { %v697_v54 = vpop.f32.mrf.mxu0 }
 0x301   :  { %v822_v60 = vmax.f32 %v696_v46, 0.0  ;;  %v698_v2 = vadd.f32 %v697_v54, %v610_v39  ;;  %841 = vst [vmem:[#allocation2 + $0x8] sm:$0xff] %v817_v50 }
 0x302   :  { %v701_v62 = vpop.f32.mrf.mxu0 }
 0x303   :  { %846 = vst [vmem:[#allocation2 + $0x30] sm:$0xff] %v822_v60  ;;  %v823_v41 = vmax.f32 %v698_v2, 0.0  ;;  %v702_v44 = vadd.f32 %v701_v62, %v1488_v56 }
 0x304   :  { %v703_v57 = vpop.f32.mrf.mxu0 }
 0x305   :  { %847 = vst [vmem:[#allocation2 + $0x38] sm:$0xff] %v823_v41  ;;  %v704_v63 = vadd.f32 %v703_v57, %v1488_v56  ;;  %v828_v59 = vmax.f32 %v702_v44, 0.0 }
 0x306   :  { %v705_v61 = vpop.f32.mrf.mxu0 }
 0x307   :  { %v706_v4 = vadd.f32 %v705_v61, %v1492_v13  ;;  %v829_v7 = vmax.f32 %v704_v63, 0.0  ;;  %852 = vst [vmem:[#allocation2 + $0x60] sm:$0xff] %v828_v59 }
 0x308   :  { %v707_v49 = vpop.f32.mrf.mxu0 }
 0x309   :  { %v834_v55 = vmax.f32 %v706_v4, 0.0  ;;  %v708_v48 = vadd.f32 %v707_v49, %v1492_v13  ;;  %853 = vst [vmem:[#allocation2 + $0x68] sm:$0xff] %v829_v7 }
 0x30b   :  { %858 = vst [vmem:[#allocation2 + $0x90] sm:$0xff] %v834_v55  ;;  %v835_v1 = vmax.f32 %v708_v48, 0.0 }
 0x30d   :  { %859 = vst [vmem:[#allocation2 + $0x98] sm:$0xff] %v835_v1 }
 0x30f   :  { %v744_v53 = vpop.f32.mrf.mxu1  ;;  %v797_v6 = vpop.f32.mrf.mxu0 }
 0x310   :  { %v745_v0 = vadd.f32 %v744_v53, %v605_v11  ;;  %v798_v12 = vadd.f32 %v797_v6, %v605_v11 }
 0x311   :  { %v746_v8 = vpop.f32.mrf.mxu1  ;;  %v799_v37 = vpop.f32.mrf.mxu0 }
 0x312   :  { %v818_v9 = vmax.f32 %v745_v0, 0.0  ;;  %v747_v16 = vadd.f32 %v746_v8, %v605_v11  ;;  %v820_v31 = vmax.f32 %v798_v12, 0.0  ;;  %v800_v15 = vadd.f32 %v799_v37, %v605_v11 }
 0x313   :  { %v748_v29 = vpop.f32.mrf.mxu1  ;;  %v801_v18 = vpop.f32.mrf.mxu0 }
 0x314   :  { %842 = vst [vmem:[#allocation2 + $0x10] sm:$0xff] %v818_v9  ;;  %v819_v10 = vmax.f32 %v747_v16, 0.0  ;;  %v749_v17 = vadd.f32 %v748_v29, %v610_v39  ;;  %844 = vst [vmem:[#allocation2 + $0x20] sm:$0xff] %v820_v31  ;;  %v821_v3 = vmax.f32 %v800_v15, 0.0  ;;  %v802_v23 = vadd.f32 %v801_v18, %v610_v39 }
 0x315   :  { %v750_v20 = vpop.f32.mrf.mxu1  ;;  %v803_v26 = vpop.f32.mrf.mxu0 }
 0x316   :  { %843 = vst [vmem:[#allocation2 + $0x18] sm:$0xff] %v819_v10  ;;  %v824_v5 = vmax.f32 %v749_v17, 0.0  ;;  %v751_v19 = vadd.f32 %v750_v20, %v610_v39  ;;  %845 = vst [vmem:[#allocation2 + $0x28] sm:$0xff] %v821_v3  ;;  %v826_v32 = vmax.f32 %v802_v23, 0.0  ;;  %v804_v22 = vadd.f32 %v803_v26, %v610_v39 }
 0x317   :  { %v754_v27 = vpop.f32.mrf.mxu1  ;;  %v807_v36 = vpop.f32.mrf.mxu0 }
 0x318   :  { %848 = vst [vmem:[#allocation2 + $0x40] sm:$0xff] %v824_v5  ;;  %v825_v35 = vmax.f32 %v751_v19, 0.0  ;;  %v755_v25 = vadd.f32 %v754_v27, %v1488_v56  ;;  %850 = vst [vmem:[#allocation2 + $0x50] sm:$0xff] %v826_v32  ;;  %v827_v38 = vmax.f32 %v804_v22, 0.0  ;;  %v808_v28 = vadd.f32 %v807_v36, %v1488_v56 }
 0x319   :  { %v756_v21 = vpop.f32.mrf.mxu1  ;;  %v809_v43 = vpop.f32.mrf.mxu0 }
 0x31a   :  { %849 = vst [vmem:[#allocation2 + $0x48] sm:$0xff] %v825_v35  ;;  %v830_v24 = vmax.f32 %v755_v25, 0.0  ;;  %v757_v51 = vadd.f32 %v756_v21, %v1488_v56  ;;  %851 = vst [vmem:[#allocation2 + $0x58] sm:$0xff] %v827_v38  ;;  %v832_v30 = vmax.f32 %v808_v28, 0.0  ;;  %v810_v34 = vadd.f32 %v809_v43, %v1488_v56 }
 0x31b   :  { %v758_v40 = vpop.f32.mrf.mxu1  ;;  %v811_v47 = vpop.f32.mrf.mxu0 }
 0x31c   :  { %854 = vst [vmem:[#allocation2 + $0x70] sm:$0xff] %v830_v24  ;;  %v831_v45 = vmax.f32 %v757_v51, 0.0  ;;  %v759_v11 = vadd.f32 %v758_v40, %v1492_v13  ;;  %856 = vst [vmem:[#allocation2 + $0x80] sm:$0xff] %v832_v30  ;;  %v833_v52 = vmax.f32 %v810_v34, 0.0  ;;  %v812_v58 = vadd.f32 %v811_v47, %v1492_v13 }
 0x31d   :  { %v760_v14 = vpop.f32.mrf.mxu1  ;;  %v813_v42 = vpop.f32.mrf.mxu0 }
 0x31e   :  { %855 = vst [vmem:[#allocation2 + $0x78] sm:$0xff] %v831_v45  ;;  %v836_v33 = vmax.f32 %v759_v11, 0.0  ;;  %v761_v39 = vadd.f32 %v760_v14, %v1492_v13  ;;  %857 = vst [vmem:[#allocation2 + $0x88] sm:$0xff] %v833_v52  ;;  %v838_v46 = vmax.f32 %v812_v58, 0.0  ;;  %v814_v54 = vadd.f32 %v813_v42, %v1492_v13 }
 0x320   :  { %860 = vst [vmem:[#allocation2 + $0xa0] sm:$0xff] %v836_v33  ;;  %v837_v50 = vmax.f32 %v761_v39, 0.0  ;;  %862 = vst [vmem:[#allocation2 + $0xb0] sm:$0xff] %v838_v46  ;;  %v839_v56 = vmax.f32 %v814_v54, 0.0 }
 0x322   :  { %861 = vst [vmem:[#allocation2 + $0xa8] sm:$0xff] %v837_v50  ;;  %863 = vst [vmem:[#allocation2 + $0xb8] sm:$0xff] %v839_v56 }
 0x323   :  { %1047 = shalt.err (!%p1044_p4)
}
 0x324   :  { %s1068_s20 = smov 768   ;;  %s1069_s0 = smov 48  }
 0x325   :  { %875 = dma.vmem_to_hbm [thread:$0]  %s870_s18, 3072, %s1515_s8, [#allocation3], %s1068_s20, %s1068_s20, %s1069_s0  }
 0x326   :  { %1056 = dma.done.wait [#allocation3], 3072  }
 0x327   :  { %1057 = vsyncadd [#allocation3], 4294964224 }
 0x328   :  { %879 = vsyncpa [#allocation3], 1 }

</bundles_post_ra>
